<compile_context>
chip_gen: v6e
topology: v6e:2x2x1
jax: 0.10.0
libtpu: 0.0.40
codegen_flags: <defaults>
</compile_context>

<pallas_src>
import jax
import jax.numpy as jnp
from jax.experimental import pallas as pl
from jax.experimental.pallas import tpu as pltpu

KSIZE = 3
STRIDE = 2
PAD = 1


def _downsample_kernel(x_ref, xh_ref, wf_ref, b_ref, o_ref):
    """One (batch element, T output rows) block of the strided conv.

    x_ref : (1, T, 2, OW+1, 2C)  xp5 row tile; [:, :, 0] = even padded rows
                                 2*oh, [:, :, 1] = odd padded rows 2*oh+1
                                 (column pairs packed in lanes).
    xh_ref: (1, 1, 1, OW+1, 2C)  halo: even padded row 2*(oh0 + T).
    wf_ref: (3, 3C, C)           per-kh fused weights [kw0 ; kw1 ; kw2] on K.
    b_ref : (1, C)
    o_ref : (1, T, OW, C)
    """
    _, T, OW, C = o_ref.shape

    xb = x_ref[0]                    # (T, 2, OW+1, 2C)
    ev = xb[:, 0]                    # rows 2*oh      (kh = 0)
    od = xb[:, 1]                    # rows 2*oh + 1  (kh = 1)
    halo = xh_ref[0, 0]              # (1, OW+1, 2C)  row 2*(oh0 + T)
    ev_next = halo if T == 1 else jnp.concatenate([ev[1:], halo], axis=0)

    def fused(strip):                # (T, OW+1, 2C) -> (T*OW, 3C)
        pairs = strip[:, :OW, :]     # kw = 0 / kw = 1 halves (lane-packed)
        shift = strip[:, 1:, :C]     # kw = 2: next column pair, first half
        return jnp.concatenate([pairs, shift], axis=-1).reshape(T * OW, 3 * C)

    # One big-M (T*OW, 3C) @ (3C, C) MXU push per kernel row.
    acc = jnp.dot(fused(ev), wf_ref[0], preferred_element_type=jnp.float32)
    acc = acc + jnp.dot(fused(od), wf_ref[1], preferred_element_type=jnp.float32)
    acc = acc + jnp.dot(fused(ev_next), wf_ref[2],
                        preferred_element_type=jnp.float32)
    acc = acc + b_ref[...].astype(jnp.float32)     # single bias bcast per step

    o_ref[...] = acc.reshape(1, T, OW, C).astype(o_ref.dtype)


def _pick_tile(N, OH, OW, C, in_itemsize, out_itemsize,
               vmem_budget_bytes=16 * 1024 * 1024):
    """Output-row tile sized so pipelined blocks + temporaries fit the budget."""
    row_in = 2 * (OW + 1) * 2 * C * in_itemsize        # even + odd strip rows
    row_out = OW * C * out_itemsize
    row_tmp = OW * C * (3 * in_itemsize + 4 + 4)       # fused operand + f32 acc
    row_bytes = 2 * (row_in + row_out) + row_tmp       # x2: double-buffered DMA
    tile = int(max(1, min(OH, vmem_budget_bytes // row_bytes)))
    # Keep at least two grid steps so both TensorCores get work (megacore).
    while N * pl.cdiv(OH, tile) < 2 and tile > 1:
        tile = pl.cdiv(tile, 2)
    return tile


def downsample(x_nchw, weight, bias, *, compute_dtype=jnp.bfloat16,
               out_dtype=jnp.float32):
    """Forward of nn.Conv2d(dim, dim, 3, stride=2, padding=1).

    x_nchw : (N, C, H, W) float32
    weight : (C_out, C_in, 3, 3)  (PyTorch Conv2d layout), C_out == C_in
    bias   : (C_out,)
    returns (N, C, H//2, W//2) in out_dtype
    """
    N, C, H, W = x_nchw.shape
    assert weight.shape == (C, C, KSIZE, KSIZE), "Downsample needs C_out == C_in"
    assert bias.shape == (C,)
    assert H % 2 == 0 and W % 2 == 0, "even spatial sizes only"
    # TODO(synk): odd H/W (ceil output rows/cols) is not covered by the
    # even/odd polyphase decomposition; fall back to XLA conv for those shapes.
    OH, OW = H // STRIDE, W // STRIDE

    tile = _pick_tile(N, OH, OW, C, jnp.dtype(compute_dtype).itemsize,
                      jnp.dtype(out_dtype).itemsize)
    nt = pl.cdiv(OH, tile)

    # --- glue: layout + pad + free polyphase reshape (no extra HBM copies) ---
    x = jnp.transpose(x_nchw, (0, 2, 3, 1)).astype(compute_dtype)      # NHWC
    xp = jnp.pad(x, ((0, 0), (PAD, PAD), (PAD, PAD), (0, 0)))          # (N,H+2,W+2,C)
    # xp5[n, i, p, j, q*C + c] == xp[n, 2i+p, 2j+q, c]   (free reshape)
    xp5 = xp.reshape(N, OH + 1, 2, OW + 1, 2 * C)

    # weight (Cout, Cin, kh, kw) -> m[kh, kw, ci, co]; fuse kw along K: (3, 3C, C)
    m = jnp.transpose(weight, (2, 3, 1, 0))
    wf = jnp.concatenate([m[:, 0], m[:, 1], m[:, 2]], axis=1).astype(compute_dtype)
    b2d = bias.reshape(1, C).astype(jnp.float32)

    # Halo row = even padded row 2*(t+1)*tile.  The clamp is only needed when
    # the last tile is partial (its halo content never feeds a valid output
    # row); it keeps the DMA in bounds.
    if OH % tile == 0:
        halo_map = lambda n, t: (n, (t + 1) * tile, 0, 0, 0)
    else:
        halo_map = lambda n, t: (n, jnp.minimum((t + 1) * tile, OH), 0, 0, 0)

    out_nhwc = pl.pallas_call(
        _downsample_kernel,
        out_shape=jax.ShapeDtypeStruct((N, OH, OW, C), out_dtype),
        grid=(N, nt),
        in_specs=[
            pl.BlockSpec((1, tile, 2, OW + 1, 2 * C),
                         lambda n, t: (n, t, 0, 0, 0)),
            pl.BlockSpec((1, 1, 1, OW + 1, 2 * C), halo_map),
            pl.BlockSpec((KSIZE, 3 * C, C), lambda n, t: (0, 0, 0)),
            pl.BlockSpec((1, C), lambda n, t: (0, 0)),
        ],
        out_specs=pl.BlockSpec((1, tile, OW, C), lambda n, t: (n, t, 0, 0)),
        compiler_params=pltpu.CompilerParams(
            dimension_semantics=("parallel", "parallel"),
            vmem_limit_bytes=32 * 1024 * 1024),
    )(xp5, xp5, wf, b2d)   # xp5 passed twice: same HBM buffer, two windows

    return jnp.transpose(out_nhwc, (0, 3, 1, 2))                       # NCHW


def _reference(x_nchw, weight, bias):
    """Pure-JAX reference for torch.nn.Conv2d(dim, dim, 3, stride=2, padding=1)."""
    y = jax.lax.conv_general_dilated(
        x_nchw, weight,
        window_strides=(STRIDE, STRIDE),
        padding=[(PAD, PAD), (PAD, PAD)],
        dimension_numbers=("NCHW", "OIHW", "NCHW"),
        precision=jax.lax.Precision.HIGHEST)
    return y + bias[None, :, None, None]


if __name__ == "__main__":
    # Small deterministic example: batch=2, dim=16, spatial=16x16
    N, DIM, H, W = 2, 16, 16, 16
    key = jax.random.PRNGKey(0)
    kx, kw_, kb = jax.random.split(key, 3)

    x = jax.random.normal(kx, (N, DIM, H, W), dtype=jnp.float32)
    fan_in = DIM * KSIZE * KSIZE
    bound = 1.0 / (fan_in ** 0.5)
    weight = jax.random.uniform(kw_, (DIM, DIM, KSIZE, KSIZE),
                                minval=-bound, maxval=bound, dtype=jnp.float32)
    bias = jax.random.uniform(kb, (DIM,), minval=-bound, maxval=bound,
                              dtype=jnp.float32)

    ref = _reference(x, weight, bias)

    # f32 compute path: tight check.
    out_f32 = jax.block_until_ready(
        downsample(x, weight, bias, compute_dtype=jnp.float32))
    assert out_f32.shape == (N, DIM, H // STRIDE, W // STRIDE), out_f32.shape
    err_f32 = float(jnp.max(jnp.abs(out_f32 - ref)))
    assert err_f32 < 1e-3, err_f32

    # bf16 MXU path (default): loose check sized for bf16 input rounding.
    out_bf16 = jax.block_until_ready(
        downsample(x, weight, bias, compute_dtype=jnp.bfloat16))
    err_bf16 = float(jnp.max(jnp.abs(out_bf16 - ref)))
    assert err_bf16 < 3e-2, err_bf16

    print("KERNEL_OK")
</pallas_src>

<mosaic_0001>
module attributes {stable_mosaic.version = 11 : i64} {
  func.func @_downsample_kernel(%arg0: i32, %arg1: i32, %arg2: memref<1x8x2x9x32xf32, #tpu.memory_space<vmem>>, %arg3: memref<1x1x1x9x32xf32, #tpu.memory_space<vmem>>, %arg4: memref<3x48x16xf32, #tpu.memory_space<vmem>>, %arg5: memref<1x16xf32, #tpu.memory_space<vmem>>, %arg6: memref<1x8x8x16xf32, #tpu.memory_space<vmem>>) attributes {dimension_semantics = [#tpu.dimension_semantics<parallel>, #tpu.dimension_semantics<parallel>], iteration_bounds = array<i64: 2, 1>, scalar_prefetch = 0 : i64, scratch_operands = 0 : i64, tpu.core_type = #tpu.core_type<tc>, window_params = [{transform_indices = @transform_0, window_bounds = array<i64: 1, 8, 2, 9, 32>}, {transform_indices = @transform_1, window_bounds = array<i64: 1, 1, 1, 9, 32>}, {pipeline_mode = #tpu.pipeline_mode<synchronous>, transform_indices = @transform_2, window_bounds = array<i64: 3, 48, 16>}, {pipeline_mode = #tpu.pipeline_mode<synchronous>, transform_indices = @transform_3, window_bounds = array<i64: 1, 16>}, {transform_indices = @transform_4, window_bounds = array<i64: 1, 8, 8, 16>}]} {
    %c0 = arith.constant 0 : index
    %c0_0 = arith.constant 0 : index
    %c0_1 = arith.constant 0 : index
    %c0_2 = arith.constant 0 : index
    %c0_3 = arith.constant 0 : index
    %0 = vector.load %arg2[%c0, %c0_0, %c0_1, %c0_2, %c0_3] : memref<1x8x2x9x32xf32, #tpu.memory_space<vmem>>, vector<1x8x2x9x32xf32>
    %1 = vector.shape_cast %0 : vector<1x8x2x9x32xf32> to vector<8x2x9x32xf32>
    %2 = vector.extract_strided_slice %1 {offsets = [0, 0, 0, 0], sizes = [8, 1, 9, 32], strides = [1, 1, 1, 1]} : vector<8x2x9x32xf32> to vector<8x1x9x32xf32>
    %3 = vector.shape_cast %2 : vector<8x1x9x32xf32> to vector<8x9x32xf32>
    %4 = vector.extract_strided_slice %1 {offsets = [0, 1, 0, 0], sizes = [8, 1, 9, 32], strides = [1, 1, 1, 1]} : vector<8x2x9x32xf32> to vector<8x1x9x32xf32>
    %5 = vector.shape_cast %4 : vector<8x1x9x32xf32> to vector<8x9x32xf32>
    %c0_4 = arith.constant 0 : index
    %c0_5 = arith.constant 0 : index
    %c0_6 = arith.constant 0 : index
    %c0_7 = arith.constant 0 : index
    %c0_8 = arith.constant 0 : index
    %6 = vector.load %arg3[%c0_4, %c0_5, %c0_6, %c0_7, %c0_8] : memref<1x1x1x9x32xf32, #tpu.memory_space<vmem>>, vector<1x1x1x9x32xf32>
    %7 = vector.shape_cast %6 : vector<1x1x1x9x32xf32> to vector<1x9x32xf32>
    %8 = vector.extract_strided_slice %3 {offsets = [1, 0, 0], sizes = [7, 9, 32], strides = [1, 1, 1]} : vector<8x9x32xf32> to vector<7x9x32xf32>
    %9 = tpu.concatenate %8, %7 in 0 : vector<7x9x32xf32>, vector<1x9x32xf32> -> vector<8x9x32xf32>
    %10 = vector.extract_strided_slice %3 {offsets = [0, 0, 0], sizes = [8, 8, 32], strides = [1, 1, 1]} : vector<8x9x32xf32> to vector<8x8x32xf32>
    %11 = vector.extract_strided_slice %3 {offsets = [0, 1, 0], sizes = [8, 8, 16], strides = [1, 1, 1]} : vector<8x9x32xf32> to vector<8x8x16xf32>
    %12 = tpu.concatenate %10, %11 in 2 : vector<8x8x32xf32>, vector<8x8x16xf32> -> vector<8x8x48xf32>
    %13 = vector.shape_cast %12 : vector<8x8x48xf32> to vector<64x48xf32>
    %c0_9 = arith.constant 0 : index
    %c0_10 = arith.constant 0 : index
    %c0_11 = arith.constant 0 : index
    %14 = vector.load %arg4[%c0_9, %c0_10, %c0_11] : memref<3x48x16xf32, #tpu.memory_space<vmem>>, vector<1x48x16xf32>
    %15 = vector.shape_cast %14 : vector<1x48x16xf32> to vector<48x16xf32>
    %cst = arith.constant dense<0.000000e+00> : vector<64x16xf32>
    %16 = tpu.matmul %13, %15, %cst {dimension_numbers = #tpu.dot_dimension_numbers<[1], [0], [0], [1], [0, 0, 1, 1], [], []>} : vector<64x48xf32>, vector<48x16xf32>, vector<64x16xf32> -> vector<64x16xf32>
    %17 = vector.extract_strided_slice %5 {offsets = [0, 0, 0], sizes = [8, 8, 32], strides = [1, 1, 1]} : vector<8x9x32xf32> to vector<8x8x32xf32>
    %18 = vector.extract_strided_slice %5 {offsets = [0, 1, 0], sizes = [8, 8, 16], strides = [1, 1, 1]} : vector<8x9x32xf32> to vector<8x8x16xf32>
    %19 = tpu.concatenate %17, %18 in 2 : vector<8x8x32xf32>, vector<8x8x16xf32> -> vector<8x8x48xf32>
    %20 = vector.shape_cast %19 : vector<8x8x48xf32> to vector<64x48xf32>
    %c1 = arith.constant 1 : index
    %c0_12 = arith.constant 0 : index
    %c0_13 = arith.constant 0 : index
    %21 = vector.load %arg4[%c1, %c0_12, %c0_13] : memref<3x48x16xf32, #tpu.memory_space<vmem>>, vector<1x48x16xf32>
    %22 = vector.shape_cast %21 : vector<1x48x16xf32> to vector<48x16xf32>
    %cst_14 = arith.constant dense<0.000000e+00> : vector<64x16xf32>
    %23 = tpu.matmul %20, %22, %cst_14 {dimension_numbers = #tpu.dot_dimension_numbers<[1], [0], [0], [1], [0, 0, 1, 1], [], []>} : vector<64x48xf32>, vector<48x16xf32>, vector<64x16xf32> -> vector<64x16xf32>
    %24 = arith.addf %16, %23 : vector<64x16xf32>
    %25 = vector.extract_strided_slice %9 {offsets = [0, 0, 0], sizes = [8, 8, 32], strides = [1, 1, 1]} : vector<8x9x32xf32> to vector<8x8x32xf32>
    %26 = vector.extract_strided_slice %9 {offsets = [0, 1, 0], sizes = [8, 8, 16], strides = [1, 1, 1]} : vector<8x9x32xf32> to vector<8x8x16xf32>
    %27 = tpu.concatenate %25, %26 in 2 : vector<8x8x32xf32>, vector<8x8x16xf32> -> vector<8x8x48xf32>
    %28 = vector.shape_cast %27 : vector<8x8x48xf32> to vector<64x48xf32>
    %c2 = arith.constant 2 : index
    %c0_15 = arith.constant 0 : index
    %c0_16 = arith.constant 0 : index
    %29 = vector.load %arg4[%c2, %c0_15, %c0_16] : memref<3x48x16xf32, #tpu.memory_space<vmem>>, vector<1x48x16xf32>
    %30 = vector.shape_cast %29 : vector<1x48x16xf32> to vector<48x16xf32>
    %cst_17 = arith.constant dense<0.000000e+00> : vector<64x16xf32>
    %31 = tpu.matmul %28, %30, %cst_17 {dimension_numbers = #tpu.dot_dimension_numbers<[1], [0], [0], [1], [0, 0, 1, 1], [], []>} : vector<64x48xf32>, vector<48x16xf32>, vector<64x16xf32> -> vector<64x16xf32>
    %32 = arith.addf %24, %31 : vector<64x16xf32>
    %c0_18 = arith.constant 0 : index
    %c0_19 = arith.constant 0 : index
    %33 = vector.load %arg5[%c0_18, %c0_19] : memref<1x16xf32, #tpu.memory_space<vmem>>, vector<1x16xf32>
    %34 = vector.broadcast %33 : vector<1x16xf32> to vector<64x16xf32>
    %35 = arith.addf %32, %34 : vector<64x16xf32>
    %36 = vector.shape_cast %35 : vector<64x16xf32> to vector<1x8x8x16xf32>
    %c0_20 = arith.constant 0 : index
    %c0_21 = arith.constant 0 : index
    %c0_22 = arith.constant 0 : index
    %c0_23 = arith.constant 0 : index
    %37 = vector.load %arg6[%c0_20, %c0_21, %c0_22, %c0_23] : memref<1x8x8x16xf32, #tpu.memory_space<vmem>>, vector<1x8x8x16xf32>
    tpu.vector_store %arg6[%c0_20, %c0_21, %c0_22, %c0_23], %36 {strides = array<i32>} : memref<1x8x8x16xf32, #tpu.memory_space<vmem>>, vector<1x8x8x16xf32>,
    return
  }
  func.func @transform_0(%arg0: i32, %arg1: i32) -> (i32, i32, i32, i32, i32) {
    %c0_i32 = arith.constant 0 : i32
    %c0_i32_0 = arith.constant 0 : i32
    %c0_i32_1 = arith.constant 0 : i32
    %c0_i32_2 = arith.constant 0 : i32
    return %arg0, %arg1, %c0_i32, %c0_i32_0, %c0_i32_1 : i32, i32, i32, i32, i32
  }
  func.func @transform_1(%arg0: i32, %arg1: i32) -> (i32, i32, i32, i32, i32) {
    %c1_i32 = arith.constant 1 : i32
    %0 = arith.addi %arg1, %c1_i32 : i32
    %c8_i32 = arith.constant 8 : i32
    %1 = arith.muli %0, %c8_i32 : i32
    %c0_i32 = arith.constant 0 : i32
    %c0_i32_0 = arith.constant 0 : i32
    %c0_i32_1 = arith.constant 0 : i32
    %c0_i32_2 = arith.constant 0 : i32
    return %arg0, %1, %c0_i32, %c0_i32_0, %c0_i32_1 : i32, i32, i32, i32, i32
  }
  func.func @transform_2(%arg0: i32, %arg1: i32) -> (i32, i32, i32) {
    %c0_i32 = arith.constant 0 : i32
    %c0_i32_0 = arith.constant 0 : i32
    %c0_i32_1 = arith.constant 0 : i32
    %c0_i32_2 = arith.constant 0 : i32
    return %c0_i32, %c0_i32_0, %c0_i32_1 : i32, i32, i32
  }
  func.func @transform_3(%arg0: i32, %arg1: i32) -> (i32, i32) {
    %c0_i32 = arith.constant 0 : i32
    %c0_i32_0 = arith.constant 0 : i32
    %c0_i32_1 = arith.constant 0 : i32
    return %c0_i32, %c0_i32_0 : i32, i32
  }
  func.func @transform_4(%arg0: i32, %arg1: i32) -> (i32, i32, i32, i32) {
    %c0_i32 = arith.constant 0 : i32
    %c0_i32_0 = arith.constant 0 : i32
    %c0_i32_1 = arith.constant 0 : i32
    return %arg0, %arg1, %c0_i32, %c0_i32_0 : i32, i32, i32, i32
  }
}

</mosaic_0001>

<bundles_post_ra>
// kernel: tpu_custom_call.1
= control target key start
LH: loop header
LB: loop body
LE: loop exit
PB: predicated region body
PF: predicated region fallthrough
CT: control target
= control target key end

     0   :  { %9 = vsyncpa [#allocation3], 0  ;;  %s1762_s0 = inlined_call_operand.vmem [shape: f32[2,9,2,9,32], index: 0, kind: input, shape index: {}]   ;;  %s1763_s1 = inlined_call_operand.vmem [shape: f32[2,9,2,9,32], index: 1, kind: input, shape index: {}]   ;;  %s1764_s2 = inlined_call_operand.vmem [shape: f32[3,48,16], index: 2, kind: input, shape index: {}]   ;;  %s1765_s3 = inlined_call_operand.vmem [shape: f32[1,16], index: 3, kind: input, shape index: {}]   ;;  %s1766_s4 = inlined_call_operand.hbm [shape: f32[2,8,8,16], index: 4, kind: output, shape index: {}]  }
   0x1   :  { %11 = vsyncpa [#allocation3 + $0x1], 0  ;;  %s1382_s15 = smov 0   ;;  %s1384_s16 = smov 0  }
   0x2   :  { %s1386_s17 = smov 0   ;;  %s1388_s18 = smov 0  }
   0x3   :  { %s1390_s19 = smov 0   ;;  %s1392_s20 = smov 0  }
   0x4 LB: > { %s1035_s21 = sadd.s32 4294967295, %s1351_s20   ;;  %s1036_s22 = sadd.s32 4294967294, %s1351_s20   ;;  %s1351_s20 = sphi %s1392_s20, %s17_s20   ;;  %s1347_s19 = sphi %s1390_s19, %s1773_s19   ;;  %s1343_s18 = sphi %s1388_s18, %s1772_s18   ;;  %s1339_s17 = sphi %s1386_s17, %s1771_s17   ;;  %s1335_s16 = sphi %s1384_s16, %s1770_s16   ;;  %s1331_s15 = sphi %s1382_s15, %s1769_s15  }
   0x5   : > { %s29_s23 = sadd.s32 1, %s1347_s19  ;;  %s140_s24 = sadd.s32 1, %s1339_s17 }
   0x6   : > { %p31_p0 = scmp.ge.s32.totalorder %s29_s23, 2  ;;  %p150_p1 = scmp.ne.s32.totalorder %s1339_s17, %s1335_s16 }
   0x7   : > { %p151_p2 = scmp.eq.s32.totalorder %s1035_s21, 1  ;;  %p156_p3 = scmp.ne.s32.totalorder %s1335_s16, %s1331_s15 }
   0x8   : > { %s1775_s23 = smov (%p31_p0, %s29_s23), 0  ;;  %p157_p5 = scmp.eq.s32.totalorder %s1036_s22, 1 }
   0x9   : > { %p1422_p4 = por %p151_p2, %p150_p1  ;;  %s135_s26 = ssub.s32 %s1347_s19, %s1775_s23 }
   0xa   : > { %p1039_p6 = scmp.ge.s32.totalorder %s1351_s20, 1  ;;  %p138_p7 = scmp.eq.s32.totalorder %s135_s26, 0 }
   0xb   : > { %p1429_p8 = por %p157_p5, %p156_p3  ;;  %p223_p9 = scmp.lt.s32.totalorder %s1351_s20, 3 }
   0xc   : > { %s1435_s28 = scalar_select %p138_p7, %s1339_s17, %s140_s24  }
   0xd   : > { %p224_p10 = pnand %p1039_p6, %p223_p9 }
   0xe   : > { %p278_p11 = scmp.lt.s32.totalorder (!%p224_p10), %s1343_s18, 1  ;;  %s1353_s26 = smov (!%p224_p10), 32  }
   0xf   : > { %227 = sbr.rel (%p224_p10) target bundleno = 397 (0x18d), region = 36  ;;  %s268_s29 = sand.u32 (!%p224_p10), 1, %s1335_s16  }
  0x10   : > { %s1040_s30 = sshll.u32 (!%p224_p10), %s268_s29, 6  ;;  %s1354_s13 = smov (!%p224_p10), [#allocation2]  }
  0x11   : > { %s270_s8 = scalar_lea.vmem (!%p224_p10), [#allocation2], %s1040_s30  ;;  %s1279_s14 = sshll.u32 (!%p224_p10), %s1354_s13, 4  ;;  %s1280_s14 = int_to_ptr.vmem [resolvable:$false] %s1279_s14 }
  0x12   : > { %s1281_s21 = scalar_lea.vmem (!%p224_p10), %s1280_s14, 2048 }
  0x14   : > { %v421_v0 = vld [vmem:[%s1764_s2 + $0x28] sm:$0xff]  ;;  %v420_v1 = vld [vmem:[%s1764_s2 + $0x20] sm:$0xff]  ;;  %v1048_v2 = vld [vmem:[%s1764_s2 + $0x58] sm:$0xff]  ;;  %s1451_s11 = scalar_select %p278_p11, %s1343_s18, 1  ;;  %vm358_vm0 = vcmask 1046528   ;;  %vm407_vm1 = vcmask 261120  }
  0x15   : > { %1154 = vmatprep.subr.mxu1 %v421_v0  ;;  %1130 = vmatprep.subr.mxu0 %v1048_v2  ;;  %v1047_v3 = vld [vmem:[%s1764_s2 + $0x50] sm:$0xff]  ;;  %v419_v4 = vld [vmem:[%s1764_s2 + $0x18] sm:$0xff]  ;;  %v1046_v5 = vld [vmem:[%s1764_s2 + $0x48] sm:$0xff]  ;;  %vm501_vm2 = vcmask 392192   ;;  %vm907_vm3 = vcmask 130048  }
  0x16   : > { %1155 = vmatpush3.msra.mxu1 %v421_v0  ;;  %1131 = vmatpush3.msra.mxu0 %v1048_v2  ;;  %s1214_s22 = smul.u32 288, %s1451_s11  ;;  %v418_v6 = vld [vmem:[%s1764_s2 + $0x10] sm:$0xff]  ;;  %v1045_v7 = vld [vmem:[%s1764_s2 + $0x40] sm:$0xff]  ;;  %v417_v8 = vld [vmem:[%s1764_s2 + $0x8] sm:$0xff]  ;;  %s932_s11 = sshll.u32 %s270_s8, 4  ;;  %s1710_s11 = int_to_ptr.vmem [resolvable:$true] %s932_s11 }
  0x17   : > { %1156 = vmatprep.subr.mxu1 %v420_v1  ;;  %1132 = vmatprep.subr.mxu0 %v1047_v3  ;;  %v416_v9 = vld [vmem:[%s1764_s2] sm:$0xff]  ;;  %v1044_v10 = vld [vmem:[%s1764_s2 + $0x38] sm:$0xff]  ;;  %v1043_v19 = vld [vmem:[%s1764_s2 + $0x30] sm:$0xff]  ;;  %s1275_s12 = scalar_lea.vmem %s1710_s11, 1024  ;;  %p1282_p1 = scmp.lt.s32.totalorder %s1710_s11, %s1280_s14 }
  0x18   : > { %1157 = vmatpush3.msra.mxu1 %v420_v1  ;;  %1133 = vmatpush3.msra.mxu0 %v1047_v3  ;;  %s1471_s7 = scalar_lea.vmem %s1762_s0, %s1214_s22  ;;  %v1556_v62 = vld [vmem:[%s1764_s2 + $0x88] sm:$0xff]  ;;  %s1086_s5 = sadd.s32 256, %s1214_s22 }
  0x19   : > { %1158 = vmatprep.subr.mxu1 %v419_v4  ;;  %1134 = vmatprep.subr.mxu0 %v1046_v5  ;;  %v1483_v11 = vld [vmem:[%s1471_s7 + $0x20] sm:$0xff]  ;;  %v313_v12 = vld [vmem:[%s1471_s7 + $0x28] sm:$0x1]  ;;  %v1493_v18 = vld [vmem:[%s1471_s7 + $0x30] sm:$0xff]  ;;  %s304_s9 = scalar_lea.vmem %s1763_s1, %s1086_s5  ;;  %p1276_p12 = scmp.ne.s32.totalorder %s1710_s11, %s1275_s12 }
  0x1a   : > { %1159 = vmatpush3.msra.mxu1 %v419_v4  ;;  %1135 = vmatpush3.msra.mxu0 %v1046_v5  ;;  %v1487_v13 = vld [vmem:[%s1471_s7] sm:$0xff]  ;;  %v362_v14 = vrot.slane %v1483_v11, 1  ;;  %v363_v15 = vrot.slane %v313_v12, 1  ;;  %v309_v16 = vld [vmem:[%s1471_s7 + $0x8] sm:$0x1]  ;;  %v441_v22 = vrot.slane %v1493_v18, 1  ;;  %p1283_p2 = scmp.lt.s32.totalorder %s1281_s21, %s1275_s12 }
  0x1b   : > { %1160 = vmatprep.subr.mxu1 %v418_v6  ;;  %1136 = vmatprep.subr.mxu0 %v1045_v7  ;;  %v359_v17 = vrot.slane %v1487_v13, 1  ;;  %v360_v20 = vrot.slane %v309_v16, 1  ;;  %v315_v21 = vld [vmem:[%s1471_s7 + $0x38] sm:$0x1]  ;;  %v1501_v23 = vld [vmem:[%s1471_s7 + $0x10] sm:$0xff]  ;;  %v1513_v32 = vld [vmem:[%s1471_s7 + $0x40] sm:$0xff]  ;;  %p1277_p13 = pnand %p1276_p12, %p1422_p4 }
  0x1c   : > { %1161 = vmatpush3.msra.mxu1 %v418_v6  ;;  %1137 = vmatpush3.msra.mxu0 %v1045_v7  ;;  %v1504_v24 = vld [vmem:[%s1471_s7 + $0x50] sm:$0xff]  ;;  %v364_v25 = vsel %vm358_vm0, %v362_v14, %v363_v15  ;;  %v442_v26 = vrot.slane %v315_v21, 1  ;;  %v311_v27 = vld [vmem:[%s1471_s7 + $0x18] sm:$0x1]  ;;  %v438_v28 = vrot.slane %v1501_v23, 1  ;;  %v365_v38 = vrot.slane %v1513_v32, 1  ;;  %p1284_p3 = por %p1283_p2, %p1282_p1 }
  0x1d   : > { %1162 = vmatprep.subr.mxu1 %v417_v8  ;;  %1138 = vmatprep.subr.mxu0 %v1044_v10  ;;  %v319_v29 = vld [vmem:[%s1471_s7 + $0x58] sm:$0x1]  ;;  %v361_v30 = vsel %vm358_vm0, %v359_v17, %v360_v20  ;;  %v439_v31 = vrot.slane %v311_v27, 1  ;;  %v317_v33 = vld [vmem:[%s1471_s7 + $0x48] sm:$0x1]  ;;  %v444_v35 = vrot.slane %v1504_v24, 1  ;;  %p1278_p0 = pneg %p1277_p13 }
  0x1e   : > { %1163 = vmatpush3.msra.mxu1 %v417_v8  ;;  %1139 = vmatpush3.msra.mxu0 %v1044_v10  ;;  %v443_v34 = vsel %vm358_vm0, %v441_v22, %v442_v26  ;;  %v445_v36 = vrot.slane %v319_v29, 1  ;;  %v366_v39 = vrot.slane %v317_v33, 1  ;;  %v1522_v40 = vld [vmem:[%s1471_s7 + $0x70] sm:$0xff]  ;;  %v323_v41 = vld [vmem:[%s1471_s7 + $0x78] sm:$0x1]  ;;  %v1526_v42 = vld [vmem:[%s1471_s7 + $0x60] sm:$0xff] }
  0x1f   : > { %385 = vrot.lane.b32.xlu1 %v364_v25, %s1353_s26  ;;  %1164 = vmatprep.subr.mxu1 %v416_v9  ;;  %v440_v37 = vsel %vm358_vm0, %v438_v28, %v439_v31  ;;  %v321_v43 = vld [vmem:[%s1471_s7 + $0x68] sm:$0x1]  ;;  %v447_v45 = vrot.slane %v1522_v40, 1  ;;  %v448_v46 = vrot.slane %v323_v41, 1  ;;  %v368_v48 = vrot.slane %v1526_v42, 1  ;;  %v1536_v50 = vld [vmem:[%s1471_s7 + $0x90] sm:$0xff]  ;;  %p1285_p5 = pnand %p1284_p3, %p1278_p0 }
  0x20   : > { %383 = vrot.lane.b32.xlu0 %v361_v30, %s1353_s26  ;;  %1165 = vmatpush3.msra.mxu1 %v416_v9  ;;  %v446_v44 = vsel %vm358_vm0, %v444_v35, %v445_v36  ;;  %v367_v47 = vsel %vm358_vm0, %v365_v38, %v366_v39  ;;  %v369_v49 = vrot.slane %v321_v43, 1  ;;  %v327_v51 = vld [vmem:[%s1471_s7 + $0x98] sm:$0x1]  ;;  %v1540_v52 = vld [vmem:[%s1471_s7 + $0x80] sm:$0xff]  ;;  %v325_v53 = vld [vmem:[%s1471_s7 + $0x88] sm:$0x1] }
  0x21   : > { %1140 = vmatprep.subr.mxu0 %v1043_v19  ;;  %v449_v54 = vsel %vm358_vm0, %v447_v45, %v448_v46  ;;  %v450_v55 = vrot.slane %v1536_v50, 1  ;;  %v451_v56 = vrot.slane %v327_v51, 1  ;;  %v371_v58 = vrot.slane %v1540_v52, 1  ;;  %v1550_v60 = vld [vmem:[%s1471_s7 + $0xb0] sm:$0xff]  ;;  %v331_v61 = vld [vmem:[%s1471_s7 + $0xb8] sm:$0x1]  ;;  %1202 = vmatprep.subr.mxu1 %v1556_v62 }
  0x22   : > { %1141 = vmatpush3.msra.mxu0 %v1043_v19  ;;  %v370_v57 = vsel %vm358_vm0, %v368_v48, %v369_v49  ;;  %v372_v59 = vrot.slane %v325_v53, 1  ;;  %v1559_v63 = vld [vmem:[%s1471_s7 + $0xa0] sm:$0xff]  ;;  %v329_v0 = vld [vmem:[%s1471_s7 + $0xa8] sm:$0x1]  ;;  %v453_v2 = vrot.slane %v1550_v60, 1  ;;  %v454_v3 = vrot.slane %v331_v61, 1 }
  0x23   : > { %464 = vrot.lane.b32.xlu1 %v443_v34, %s1353_s26  ;;  %1178 = vmatprep.subr.mxu0 %v1556_v62  ;;  %v452_v1 = vsel %vm358_vm0, %v450_v55, %v451_v56  ;;  %v374_v5 = vrot.slane %v1559_v63, 1  ;;  %v375_v6 = vrot.slane %v329_v0, 1  ;;  %v1571_v7 = vld [vmem:[%s1471_s7 + $0xd0] sm:$0xff]  ;;  %v335_v8 = vld [vmem:[%s1471_s7 + $0xd8] sm:$0x1]  ;;  %v1575_v9 = vld [vmem:[%s1471_s7 + $0xc0] sm:$0xff] }
  0x24   : > { %462 = vrot.lane.b32.xlu0 %v440_v37, %s1353_s26  ;;  %v373_v4 = vsel %vm358_vm0, %v371_v58, %v372_v59  ;;  %v333_v10 = vld [vmem:[%s1471_s7 + $0xc8] sm:$0x1]  ;;  %v455_v12 = vsel %vm358_vm0, %v453_v2, %v454_v3  ;;  %v456_v14 = vrot.slane %v1571_v7, 1  ;;  %v457_v15 = vrot.slane %v335_v8, 1  ;;  %v1587_v20 = vld [vmem:[%s1471_s7 + $0xf0] sm:$0xff]  ;;  %v1591_v22 = vld [vmem:[%s1471_s7 + $0xe0] sm:$0xff] }
  0x25   : > { %v376_v16 = vsel %vm358_vm0, %v374_v5, %v375_v6  ;;  %v377_v17 = vrot.slane %v1575_v9, 1  ;;  %v378_v19 = vrot.slane %v333_v10, 1  ;;  %v339_v21 = vld [vmem:[%s1471_s7 + $0xf8] sm:$0x1]  ;;  %v337_v25 = vld [vmem:[%s1471_s7 + $0xe8] sm:$0x1] }
  0x26   : > { %v458_v26 = vsel %vm358_vm0, %v456_v14, %v457_v15  ;;  %v459_v27 = vrot.slane %v1587_v20, 1  ;;  %v460_v28 = vrot.slane %v339_v21, 1  ;;  %v380_v30 = vrot.slane %v1591_v22, 1  ;;  %v1603_v33 = vld [vmem:[%s304_s9] sm:$0xff]  ;;  %v341_v34 = vld [vmem:[%s304_s9 + $0x8] sm:$0x1] }
  0x27   : > { %466 = vrot.lane.b32.xlu1 %v446_v44, %s1353_s26  ;;  %v379_v29 = vsel %vm358_vm0, %v377_v17, %v378_v19  ;;  %v381_v31 = vrot.slane %v337_v25, 1  ;;  %v762_v37 = vrot.slane %v1603_v33, 1  ;;  %v763_v38 = vrot.slane %v341_v34, 1  ;;  %v1069_v46 = vld [vmem:[%s1764_s2 + $0x80] sm:$0xff]  ;;  %s1087_s9 = sshll.u32 %s1343_s18, 10  ;;  %s1717_s18 = scalar_lea.sflag [#allocation3], %s268_s29 }
  0x28   : > { %387 = vrot.lane.b32.xlu0 %v367_v47, %s1353_s26  ;;  %v461_v35 = vsel %vm358_vm0, %v459_v27, %v460_v28  ;;  %v1079_v34 = vld [vmem:[%s1765_s3] ss:$0 sm:$0xff]  ;;  %s1708_s10 = scalar_lea.hbm %s1766_s4, %s1087_s9 }
  0x29   : > { %v382_v36 = vsel %vm358_vm0, %v380_v30, %v381_v31  ;;  %v764_v39 = vsel %vm358_vm0, %v762_v37, %v763_v38 }
  0x2b   : > { %468 = vrot.lane.b32.xlu1 %v449_v54, %s1353_s26  ;;  %v1067_v54 = vld [vmem:[%s1764_s2 + $0x70] sm:$0xff] }
  0x2c   : > { %389 = vrot.lane.b32.xlu0 %v370_v57, %s1353_s26  ;;  %v1066_v57 = vld [vmem:[%s1764_s2 + $0x68] sm:$0xff] }
  0x2f   : > { %470 = vrot.lane.b32.xlu1 %v452_v1, %s1353_s26 }
  0x30   : > { %391 = vrot.lane.b32.xlu0 %v373_v4, %s1353_s26 }
  0x33   : > { %472 = vrot.lane.b32.xlu1 %v455_v12, %s1353_s26 }
  0x34   : > { %393 = vrot.lane.b32.xlu0 %v376_v16, %s1353_s26 }
  0x37   : > { %474 = vrot.lane.b32.xlu1 %v458_v26, %s1353_s26 }
  0x38   : > { %395 = vrot.lane.b32.xlu0 %v379_v29, %s1353_s26 }
  0x3b   : > { %476 = vrot.lane.b32.xlu1 %v461_v35, %s1353_s26 }
  0x3c   : > { %397 = vrot.lane.b32.xlu0 %v382_v36, %s1353_s26 }
  0x40   : > { %765 = vrot.lane.b32.xlu0 %v764_v39, %s1353_s26 }
  0x91   : > { %v386_v41 = vpop.permute.xlu1 %385 }
  0x92   : > { %v1616_v43 = vsel %vm407_vm1, %v1483_v11, %v386_v41  ;;  %v384_v44 = vpop.permute.xlu0 %383  ;;  %v1068_v11 = vld [vmem:[%s1764_s2 + $0x78] sm:$0xff] }
  0x93   : > { %v408_v45 = vsel %vm407_vm1, %v1487_v13, %v384_v44 }
  0x94   : > { %1166 = vmatprep.mubr.msk.f32.mxu1 %vm501_vm2, %v408_v45 }
  0x95   : > { %1167 = vmatmul.mubr.msk.f32.vlgmr.msra.gmra.mxu1 %vm501_vm2, %v1616_v43  ;;  %v465_v47 = vpop.permute.xlu1 %464 }
  0x96   : > { %v487_v48 = vsel %vm407_vm1, %v1493_v18, %v465_v47  ;;  %v463_v49 = vpop.permute.xlu0 %462  ;;  %1208 = vmatpush3.msra.mxu1 %v1556_v62 }
  0x97   : > { %v486_v13 = vsel %vm407_vm1, %v1501_v23, %v463_v49  ;;  %1203 = vmatprep.subr.mxu1 %v1069_v46 }
  0x98   : > { %1142 = vmatprep.mubr.msk.f32.mxu0 %vm501_vm2, %v486_v13  ;;  %1209 = vmatpush3.msra.mxu1 %v1069_v46 }
  0x99   : > { %1143 = vmatmul.mubr.msk.f32.vlgmr.msra.gmra.mxu0 %vm501_vm2, %v487_v48  ;;  %v467_v51 = vpop.permute.xlu1 %466  ;;  %1204 = vmatprep.subr.mxu1 %v1068_v11 }
  0x9a   : > { %v488_v18 = vsel %vm407_vm1, %v1504_v24, %v467_v51  ;;  %v388_v53 = vpop.permute.xlu0 %387  ;;  %1179 = vmatpush3.msra.mxu0 %v1556_v62  ;;  %1210 = vmatpush3.msra.mxu1 %v1068_v11 }
  0x9b   : > { %v410_v23 = vsel %vm407_vm1, %v1513_v32, %v388_v53  ;;  %1145 = vmatprep.mubr.msk.f32.mxu0 %vm501_vm2, %v488_v18  ;;  %1180 = vmatprep.subr.mxu0 %v1069_v46 }
  0x9c   : > { %1169 = vmatprep.mubr.msk.f32.mxu1 %vm501_vm2, %v410_v23  ;;  %1181 = vmatpush3.msra.mxu0 %v1069_v46 }
  0x9d   : > { %v469_v55 = vpop.permute.xlu1 %468  ;;  %1182 = vmatprep.subr.mxu0 %v1068_v11  ;;  %1205 = vmatprep.subr.mxu1 %v1067_v54 }
  0x9e   : > { %v489_v24 = vsel %vm407_vm1, %v1522_v40, %v469_v55  ;;  %v390_v56 = vpop.permute.xlu0 %389  ;;  %1183 = vmatpush3.msra.mxu0 %v1068_v11  ;;  %1211 = vmatpush3.msra.mxu1 %v1067_v54  ;;  %v1065_v40 = vld [vmem:[%s1764_s2 + $0x60] sm:$0xff] }
  0x9f   : > { %v411_v32 = vsel %vm407_vm1, %v1526_v42, %v390_v56  ;;  %1146 = vmatmul.mubr.msk.f32.gmra.mxu0 %vm501_vm2, %v489_v24  ;;  %1184 = vmatprep.subr.mxu0 %v1067_v54 }
  0xa0   : > { %1170 = vmatmul.mubr.msk.f32.gmra.mxu1 %vm501_vm2, %v411_v32  ;;  %1185 = vmatpush3.msra.mxu0 %v1067_v54 }
  0xa1   : > { %v471_v58 = vpop.permute.xlu1 %470  ;;  %1186 = vmatprep.subr.mxu0 %v1066_v57  ;;  %1206 = vmatprep.subr.mxu1 %v1066_v57 }
  0xa2   : > { %v490_v59 = vsel %vm407_vm1, %v1536_v50, %v471_v58  ;;  %v392_v61 = vpop.permute.xlu0 %391  ;;  %1187 = vmatpush3.msra.mxu0 %v1066_v57  ;;  %1212 = vmatpush3.msra.mxu1 %v1066_v57 }
  0xa3   : > { %v412_v42 = vsel %vm407_vm1, %v1540_v52, %v392_v61  ;;  %1148 = vmatprep.mubr.msk.f32.mxu0 %vm501_vm2, %v490_v59  ;;  %1188 = vmatprep.subr.mxu0 %v1065_v40 }
  0xa4   : > { %1172 = vmatprep.mubr.msk.f32.mxu1 %vm501_vm2, %v412_v42  ;;  %1207 = vmatprep.subr.mxu1 %v1065_v40 }
  0xa5   : > { %v473_v62 = vpop.permute.xlu1 %472  ;;  %1189 = vmatpush3.msra.mxu0 %v1065_v40  ;;  %1213 = vmatpush3.msra.mxu1 %v1065_v40 }
  0xa6   : > { %v491_v0 = vsel %vm407_vm1, %v1550_v60, %v473_v62  ;;  %v394_v1 = vpop.permute.xlu0 %393 }
  0xa7   : > { %v413_v50 = vsel %vm407_vm1, %v1559_v63, %v394_v1  ;;  %1149 = vmatmul.mubr.msk.f32.gmra.mxu0 %vm501_vm2, %v491_v0 }
  0xa8   : > { %1173 = vmatmul.mubr.msk.f32.gmra.mxu1 %vm501_vm2, %v413_v50 }
  0xa9   : > { %v475_v52 = vpop.permute.xlu1 %474 }
  0xaa   : > { %v492_v2 = vsel %vm407_vm1, %v1571_v7, %v475_v52  ;;  %v396_v3 = vpop.permute.xlu0 %395 }
  0xab   : > { %v414_v4 = vsel %vm407_vm1, %v1575_v9, %v396_v3  ;;  %1151 = vmatprep.mubr.msk.f32.mxu0 %vm501_vm2, %v492_v2 }
  0xac   : > { %1175 = vmatprep.mubr.msk.f32.mxu1 %vm501_vm2, %v414_v4 }
  0xad   : > { %v477_v60 = vpop.permute.xlu1 %476 }
  0xae   : > { %v493_v63 = vsel %vm407_vm1, %v1587_v20, %v477_v60  ;;  %v398_v5 = vpop.permute.xlu0 %397 }
  0xaf   : > { %v415_v6 = vsel %vm407_vm1, %v1591_v22, %v398_v5  ;;  %1152 = vmatmul.mubr.msk.f32.gmra.mxu0 %vm501_vm2, %v493_v63 }
  0xb0   : > { %1176 = vmatmul.mubr.msk.f32.gmra.mxu1 %vm501_vm2, %v415_v6  ;;  %1190 = vmatprep.mubr.msk.f32.mxu0 %vm501_vm2, %v1616_v43 }
  0xb1   : > { %1196 = vmatprep.mubr.msk.f32.mxu1 %vm501_vm2, %v413_v50 }
  0xb2   : > { %v766_v7 = vpop.permute.xlu0 %765 }
  0xb3   : > { %1191 = vmatmul.mubr.msk.f32.vlgmr.msra.gmra.mxu0 %vm501_vm2, %v410_v23  ;;  %v768_v8 = vsel %vm407_vm1, %v1603_v33, %v766_v7 }
  0xb4   : > { %1197 = vmatmul.mubr.msk.f32.vlgmr.msra.gmra.mxu1 %vm501_vm2, %v414_v4  ;;  %1193 = vmatprep.mubr.msk.f32.mxu0 %vm501_vm2, %v411_v32 }
  0xb5   : > { %1199 = vmatprep.mubr.msk.f32.mxu1 %vm501_vm2, %v415_v6 }
  0xb7   : > { %1194 = vmatmul.mubr.msk.f32.gmra.mxu0 %vm501_vm2, %v412_v42 }
  0xb8   : > { %1200 = vmatmul.mubr.msk.f32.gmra.mxu1 %vm501_vm2, %v768_v8 }
 0x155   : > { %v1168_v10 = vpop.f32.mrf.mxu1 }
 0x157   : > { %v721_v14 = vpop.f32.mrf.mxu1 }
 0x159   : > { %v1144_v9 = vpop.f32.mrf.mxu0 }
 0x15a   : > { %v727_v29 = vadd.f32 %v1168_v10, %v1144_v9 }
 0x15b   : > { %v592_v12 = vpop.f32.mrf.mxu0 }
 0x15c   : > { %v722_v35 = vadd.f32 %v721_v14, %v592_v12 }
 0x15f   : > { %v1147_v15 = vpop.f32.mrf.mxu0 }
 0x160   : > { %v1171_v16 = vpop.f32.mrf.mxu1 }
 0x161   : > { %v602_v17 = vpop.f32.mrf.mxu0  ;;  %v737_v43 = vadd.f32 %v1171_v16, %v1147_v15 }
 0x162   : > { %v731_v19 = vpop.f32.mrf.mxu1 }
 0x163   : > { %v732_v13 = vadd.f32 %v731_v19, %v602_v17 }
 0x167   : > { %v1150_v20 = vpop.f32.mrf.mxu0 }
 0x168   : > { %v1174_v21 = vpop.f32.mrf.mxu1 }
 0x169   : > { %v612_v22 = vpop.f32.mrf.mxu0  ;;  %v747_v31 = vadd.f32 %v1174_v21, %v1150_v20 }
 0x16a   : > { %v741_v25 = vpop.f32.mrf.mxu1 }
 0x16b   : > { %v742_v38 = vadd.f32 %v741_v25, %v612_v22 }
 0x16f   : > { %v1153_v26 = vpop.f32.mrf.mxu0 }
 0x170   : > { %v1177_v27 = vpop.f32.mrf.mxu1 }
 0x171   : > { %v622_v28 = vpop.f32.mrf.mxu0  ;;  %v757_v47 = vadd.f32 %v1177_v27, %v1153_v26 }
 0x172   : > { %v751_v30 = vpop.f32.mrf.mxu1 }
 0x173   : > { %v1192_v33 = vpop.f32.mrf.mxu0  ;;  %v752_v54 = vadd.f32 %v751_v30, %v622_v28 }
 0x174   : > { %v885_v36 = vadd.f32 %v1192_v33, %v727_v29  ;;  %v1198_v37 = vpop.f32.mrf.mxu1 }
 0x175   : > { %v889_v39 = vadd.f32 %v1198_v37, %v747_v31  ;;  %v845_v41 = vpop.f32.mrf.mxu0 }
 0x176   : > { %v900_v44 = vadd.f32 %v1079_v34, %v885_v36  ;;  %v884_v45 = vadd.f32 %v845_v41, %v722_v35  ;;  %v865_v46 = vpop.f32.mrf.mxu1 }
 0x177   : > { %v904_v48 = vadd.f32 %v1079_v34, %v889_v39  ;;  %v888_v49 = vadd.f32 %v865_v46, %v742_v38  ;;  %v1195_v11 = vpop.f32.mrf.mxu0 }
 0x178   : > { %909 = vst.msk [vmem:[%s270_s8 + $0x8] sm:$0xff] %vm907_vm3, %v900_v44  ;;  %v899_v51 = vadd.f32 %v1079_v34, %v884_v45  ;;  %v887_v18 = vadd.f32 %v1195_v11, %v737_v43  ;;  %v1201_v53 = vpop.f32.mrf.mxu1 }
 0x179   : > { %913 = vst.msk [vmem:[%s270_s8 + $0x28] sm:$0xff] %vm907_vm3, %v904_v48  ;;  %v903_v23 = vadd.f32 %v1079_v34, %v888_v49  ;;  %v891_v55 = vadd.f32 %v1201_v53, %v757_v47  ;;  %v855_v24 = vpop.f32.mrf.mxu0 }
 0x17a   : > { %908 = vst.msk [vmem:[%s270_s8] sm:$0xff] %vm907_vm3, %v899_v51  ;;  %v902_v56 = vadd.f32 %v1079_v34, %v887_v18  ;;  %v886_v57 = vadd.f32 %v855_v24, %v732_v13  ;;  %v875_v32 = vpop.f32.mrf.mxu1 }
 0x17b   : > { %912 = vst.msk [vmem:[%s270_s8 + $0x20] sm:$0xff] %vm907_vm3, %v903_v23  ;;  %v906_v40 = vadd.f32 %v1079_v34, %v891_v55  ;;  %v890_v58 = vadd.f32 %v875_v32, %v752_v54 }
 0x17c   : > { %911 = vst.msk [vmem:[%s270_s8 + $0x18] sm:$0xff] %vm907_vm3, %v902_v56  ;;  %v901_v59 = vadd.f32 %v1079_v34, %v886_v57 }
 0x17d   : > { %915 = vst.msk [vmem:[%s270_s8 + $0x38] sm:$0xff] %vm907_vm3, %v906_v40  ;;  %v905_v61 = vadd.f32 %v1079_v34, %v890_v58 }
 0x17e   : > { %910 = vst.msk [vmem:[%s270_s8 + $0x10] sm:$0xff] %vm907_vm3, %v901_v59 }
 0x17f   : > { %914 = vst.msk [vmem:[%s270_s8 + $0x30] sm:$0xff] %vm907_vm3, %v905_v61 }
 0x180   : > { %1288 = shalt.err (!%p1285_p5)
}
 0x181   : > { %s1289_s24 = scalar_lea.hbm %s1708_s10, 1024  ;;  %s1293_s30 = scalar_lea.hbm %s1766_s4, 2048 }
 0x182   : > { %p1290_p6 = scmp.ne.s32.totalorder %s1708_s10, %s1289_s24  ;;  %p1294_p10 = scmp.lt.s32.totalorder %s1708_s10, %s1766_s4 }
 0x183   : > { %p1295_p11 = scmp.lt.s32.totalorder %s1293_s30, %s1289_s24 }
 0x184   : > { %p1291_p7 = pnand %p1290_p6, %p1422_p4 }
 0x185   : > { %p1296_p12 = por %p1295_p11, %p1294_p10 }
 0x186   : > { %p1292_p9 = pneg %p1291_p7 }
 0x188   : > { %p1297_p13 = pnand %p1296_p12, %p1292_p9 }
 0x18a   : > { %1300 = shalt.err (!%p1297_p13)
}
 0x18b   : > { %s1355_s8 = smov 128   ;;  %s1356_s9 = smov 8  }
 0x18c   : > { %1216 = dma.vmem_to_hbm [thread:$0]  (%p1422_p4), %s1710_s11, 1024, %s1708_s10, %s1717_s18, %s1355_s8, %s1355_s8, %s1356_s9  }
 0x18d PF: > { %p1223_p0 = scmp.ge.s32.totalorder %s1351_s20, 2  ;;  %s947_s22 = sand.u32 1, %s1331_s15  }
 0x18e   : > { %s948_s7 = scalar_lea.sflag [#allocation3], %s947_s22 }
 0x18f   : > { %p1219_p1 = pnand %p1223_p0, %p1429_p8 }
 0x191   : > { %p1220_p2 = pneg %p1219_p1 }
 0x193   : > { %1326 = dma.done.wait (%p1220_p2), %s948_s7, 1024  }
 0x194   : > { %1328 = vsyncadd (%p1220_p2), %s948_s7, 4294966272  ;;  %s17_s20 = sadd.s32 1, %s1351_s20   ;;  %s1769_s15 = smov %s1335_s16 }
 0x195   : > { %p14_p3 = scmp.ge.s32.totalorder %s17_s20, 4   ;;  %s1770_s16 = smov %s1339_s17 }
 0x196   : > { %s1771_s17 = smov %s1435_s28  ;;  %s1772_s18 = smov %s1347_s19 }
 0x197   : > { %s1773_s19 = smov %s1775_s23  ;;  %16 = sbr.rel (!%p14_p3) target bundleno = 4 (0x4), region = 76 }
 0x19c   :  { %953 = vsyncpa [#allocation3], 1 }
 0x19d   :  { %955 = vsyncpa [#allocation3 + $0x1], 1 }

</bundles_post_ra>
